<compile_context>
chip_gen: v7x
topology: tpu7x:2x2x1
jax: 0.10.0
libtpu: 0.0.40
codegen_flags: <defaults>
</compile_context>

<pallas_src>
import jax
import jax.numpy as jnp
from jax.experimental import pallas as pl
from jax.experimental.pallas import tpu as pltpu


def img_decoder_kernel(x_ref, w1_ref, b1_ref, w2_ref, b2_ref, w3_ref, b3_ref, o_ref):
    # fc1: Linear(64, 128) + ReLU   (bf16 operands, f32 accumulation)
    x_bf = x_ref[...].astype(jnp.bfloat16)
    h1 = jnp.dot(x_bf, w1_ref[...], preferred_element_type=jnp.float32)
    h1 = jnp.maximum(h1 + b1_ref[...], 0.0)                      # f32 bias + ReLU
    # fc2: Linear(128, 256) + ReLU
    h2 = jnp.dot(h1.astype(jnp.bfloat16), w2_ref[...],
                 preferred_element_type=jnp.float32)
    h2 = jnp.maximum(h2 + b2_ref[...], 0.0)
    # fc3: Linear(256, 512) (no activation)
    h3 = jnp.dot(h2.astype(jnp.bfloat16), w3_ref[...],
                 preferred_element_type=jnp.float32) + b3_ref[...]
    o_ref[...] = h3.astype(o_ref.dtype)


def _round_up(v, m):
    return ((v + m - 1) // m) * m


def img_decoder(x, params, *, batch_tile=None, out_dtype=None):
    """x: [B, 64] float32 or bfloat16.

    params: dict with (w1,b1,w2,b2,w3,b3); w_i stored [in_features, out_features].
    out_dtype: output dtype; default = x.dtype (f32 keeps the PyTorch module's
    semantics).  Pass jnp.bfloat16 to halve output HBM traffic if the consumer
    tolerates bf16.
    """
    B, D_in = x.shape
    assert D_in == 64, D_in
    w1, b1, w2, b2, w3, b3 = (params[k] for k in ("w1", "b1", "w2", "b2", "w3", "b3"))
    D_h1, D_h2, D_out = w1.shape[1], w2.shape[1], w3.shape[1]
    if out_dtype is None:
        out_dtype = x.dtype

    # Weights in bf16: weight DMA is fetched once per call and the MXU is
    # bf16-native.  Biases stay f32, presented as [1, out] so they broadcast
    # over batch sublanes.
    w1 = w1.astype(jnp.bfloat16)
    w2 = w2.astype(jnp.bfloat16)
    w3 = w3.astype(jnp.bfloat16)
    b1_2d = b1.astype(jnp.float32).reshape(1, -1)
    b2_2d = b2.astype(jnp.float32).reshape(1, -1)
    b3_2d = b3.astype(jnp.float32).reshape(1, -1)

    # --- Batch-tile selection -------------------------------------------------
    # Small B: one grid step covering the whole batch (sublane-aligned).
    # Large B: target 2048-row tiles (per-step DMA >> ~0.35 us step overhead),
    # but cap at round_up(B/2, 8) so grid_b >= 2 and v7x can shard the grid
    # across both TensorCores.
    if batch_tile is None:
        if B <= 1024:
            batch_tile = _round_up(max(B, 8), 8)
        else:
            batch_tile = min(2048, _round_up(pl.cdiv(B, 2), 8))
    batch_tile = max(8, _round_up(int(batch_tile), 8))

    grid_b = pl.cdiv(B, batch_tile)   # partial last block handled by Pallas

    # --- VMEM budget ------------------------------------------------------------
    # Per-row bytes: double-buffered x tile + double-buffered out tile + f32
    # h1/h2/h3 temporaries + bf16 MXU-input copies.  Weights/biases are
    # grid-invariant but double-buffered by default (negligible, ~0.7 MiB).
    x_itemsize = jnp.dtype(x.dtype).itemsize
    out_itemsize = jnp.dtype(out_dtype).itemsize
    bytes_per_row = (
        2 * D_in * x_itemsize
        + 2 * D_out * out_itemsize
        + (D_h1 + D_h2 + D_out) * 4
        + (D_in + D_h1 + D_h2) * 2
    )
    weight_bytes = 2 * 2 * (D_in * D_h1 + D_h1 * D_h2 + D_h2 * D_out) \
        + 2 * 4 * (D_h1 + D_h2 + D_out)
    vmem_est = batch_tile * bytes_per_row + weight_bytes
    # Floor 32 MiB (v5e default scoped limit is only 16 MiB), cap 56 MiB
    # (headroom on v7x's 64 MiB physical VMEM).
    vmem_limit = int(min(max(vmem_est * 3 // 2, 32 << 20), 56 << 20))

    full = lambda arr: pl.BlockSpec(arr.shape, lambda i: (0, 0))  # grid-invariant

    out = pl.pallas_call(
        img_decoder_kernel,
        out_shape=jax.ShapeDtypeStruct((B, D_out), out_dtype),
        grid_spec=pl.GridSpec(
            grid=(grid_b,),
            in_specs=[
                pl.BlockSpec((batch_tile, D_in), lambda i: (i, 0)),   # x tile
                full(w1), full(b1_2d),
                full(w2), full(b2_2d),
                full(w3), full(b3_2d),
            ],
            out_specs=pl.BlockSpec((batch_tile, D_out), lambda i: (i, 0)),
        ),
        compiler_params=pltpu.CompilerParams(
            dimension_semantics=("parallel",),
            vmem_limit_bytes=vmem_limit,
        ),
    )(x, w1, b1_2d, w2, b2_2d, w3, b3_2d)

    return out


def init_params(key):
    """Deterministic synthetic params matching nn.Linear shapes (stored as [in, out])."""
    dims = [(64, 128), (128, 256), (256, 512)]
    params = {}
    for idx, (din, dout) in enumerate(dims, start=1):
        key, kw, kb = jax.random.split(key, 3)
        bound = 1.0 / jnp.sqrt(din)  # same scale rule as torch's default init
        params[f"w{idx}"] = jax.random.uniform(
            kw, (din, dout), jnp.float32, minval=-bound, maxval=bound)
        params[f"b{idx}"] = jax.random.uniform(
            kb, (dout,), jnp.float32, minval=-bound, maxval=bound)
    return params


def img_decoder_ref(x, params):
    h = jnp.maximum(x @ params["w1"] + params["b1"], 0.0)
    h = jnp.maximum(h @ params["w2"] + params["b2"], 0.0)
    return h @ params["w3"] + params["b3"]


if __name__ == "__main__":
    key = jax.random.PRNGKey(0)
    key, kx = jax.random.split(key)

    B = 20  # small batch, deliberately NOT a multiple of 8 (partial-block path)
    x = jax.random.normal(kx, (B, 64), jnp.float32)
    params = init_params(key)
    ref = img_decoder_ref(x, params)

    # Default tile (single grid step, partial block handled by Pallas masking).
    out = jax.block_until_ready(img_decoder(x, params))
    assert out.shape == (B, 512), out.shape
    assert out.dtype == jnp.float32, out.dtype
    # bf16 weights/activations on the MXU -> loosened tolerance vs f32 reference.
    assert jnp.allclose(out, ref, atol=5e-2, rtol=5e-2), "mismatch (default tile)"

    # Small explicit tile -> multi-step grid with a partial LAST block (4 valid
    # rows); locks in correctness of relying on Pallas OOB-write masking.
    out_tiled = jax.block_until_ready(img_decoder(x, params, batch_tile=8))
    assert out_tiled.shape == (B, 512), out_tiled.shape
    assert jnp.allclose(out_tiled, ref, atol=5e-2, rtol=5e-2), "mismatch (tiled)"

    # bf16 output mode (halves output HBM traffic; opt-in).
    out_bf16 = jax.block_until_ready(img_decoder(x, params, out_dtype=jnp.bfloat16))
    assert out_bf16.shape == (B, 512) and out_bf16.dtype == jnp.bfloat16
    assert jnp.allclose(out_bf16.astype(jnp.float32), ref, atol=1e-1, rtol=1e-1), \
        "mismatch (bf16 output)"

    print("KERNEL_OK")
</pallas_src>

<mosaic_0001>
module attributes {stable_mosaic.version = 11 : i64} {
  func.func @img_decoder_kernel(%arg0: i32, %arg1: memref<24x64xf32, #tpu.memory_space<vmem>>, %arg2: memref<64x128xbf16, #tpu.memory_space<vmem>>, %arg3: memref<1x128xf32, #tpu.memory_space<vmem>>, %arg4: memref<128x256xbf16, #tpu.memory_space<vmem>>, %arg5: memref<1x256xf32, #tpu.memory_space<vmem>>, %arg6: memref<256x512xbf16, #tpu.memory_space<vmem>>, %arg7: memref<1x512xf32, #tpu.memory_space<vmem>>, %arg8: memref<24x512xf32, #tpu.memory_space<vmem>>) attributes {dimension_semantics = [#tpu.dimension_semantics<parallel>], iteration_bounds = array<i64: 1>, scalar_prefetch = 0 : i64, scratch_operands = 0 : i64, tpu.core_type = #tpu.core_type<tc>, window_params = [{transform_indices = @transform_0, window_bounds = array<i64: 24, 64>}, {pipeline_mode = #tpu.pipeline_mode<synchronous>, transform_indices = @transform_1, window_bounds = array<i64: 64, 128>}, {pipeline_mode = #tpu.pipeline_mode<synchronous>, transform_indices = @transform_2, window_bounds = array<i64: 1, 128>}, {pipeline_mode = #tpu.pipeline_mode<synchronous>, transform_indices = @transform_3, window_bounds = array<i64: 128, 256>}, {pipeline_mode = #tpu.pipeline_mode<synchronous>, transform_indices = @transform_4, window_bounds = array<i64: 1, 256>}, {pipeline_mode = #tpu.pipeline_mode<synchronous>, transform_indices = @transform_5, window_bounds = array<i64: 256, 512>}, {pipeline_mode = #tpu.pipeline_mode<synchronous>, transform_indices = @transform_6, window_bounds = array<i64: 1, 512>}, {transform_indices = @transform_7, window_bounds = array<i64: 24, 512>}]} {
    %c0 = arith.constant 0 : index
    %c0_0 = arith.constant 0 : index
    %0 = vector.load %arg1[%c0, %c0_0] : memref<24x64xf32, #tpu.memory_space<vmem>>, vector<24x64xf32>
    %1 = arith.truncf %0 : vector<24x64xf32> to vector<24x64xbf16>
    %c0_1 = arith.constant 0 : index
    %c0_2 = arith.constant 0 : index
    %2 = vector.load %arg2[%c0_1, %c0_2] : memref<64x128xbf16, #tpu.memory_space<vmem>>, vector<64x128xbf16>
    %cst = arith.constant dense<0.000000e+00> : vector<24x128xf32>
    %3 = tpu.matmul %1, %2, %cst {dimension_numbers = #tpu.dot_dimension_numbers<[1], [0], [0], [1], [0, 0, 1, 1], [], []>} : vector<24x64xbf16>, vector<64x128xbf16>, vector<24x128xf32> -> vector<24x128xf32>
    %c0_3 = arith.constant 0 : index
    %c0_4 = arith.constant 0 : index
    %4 = vector.load %arg3[%c0_3, %c0_4] : memref<1x128xf32, #tpu.memory_space<vmem>>, vector<1x128xf32>
    %5 = vector.broadcast %4 : vector<1x128xf32> to vector<24x128xf32>
    %6 = arith.addf %3, %5 : vector<24x128xf32>
    %cst_5 = arith.constant 0.000000e+00 : f32
    %7 = vector.broadcast %cst_5 : f32 to vector<24x128xf32>
    %8 = arith.maximumf %6, %7 : vector<24x128xf32>
    %9 = arith.truncf %8 : vector<24x128xf32> to vector<24x128xbf16>
    %c0_6 = arith.constant 0 : index
    %c0_7 = arith.constant 0 : index
    %10 = vector.load %arg4[%c0_6, %c0_7] : memref<128x256xbf16, #tpu.memory_space<vmem>>, vector<128x256xbf16>
    %cst_8 = arith.constant dense<0.000000e+00> : vector<24x256xf32>
    %11 = tpu.matmul %9, %10, %cst_8 {dimension_numbers = #tpu.dot_dimension_numbers<[1], [0], [0], [1], [0, 0, 1, 1], [], []>} : vector<24x128xbf16>, vector<128x256xbf16>, vector<24x256xf32> -> vector<24x256xf32>
    %c0_9 = arith.constant 0 : index
    %c0_10 = arith.constant 0 : index
    %12 = vector.load %arg5[%c0_9, %c0_10] : memref<1x256xf32, #tpu.memory_space<vmem>>, vector<1x256xf32>
    %13 = vector.broadcast %12 : vector<1x256xf32> to vector<24x256xf32>
    %14 = arith.addf %11, %13 : vector<24x256xf32>
    %cst_11 = arith.constant 0.000000e+00 : f32
    %15 = vector.broadcast %cst_11 : f32 to vector<24x256xf32>
    %16 = arith.maximumf %14, %15 : vector<24x256xf32>
    %17 = arith.truncf %16 : vector<24x256xf32> to vector<24x256xbf16>
    %c0_12 = arith.constant 0 : index
    %c0_13 = arith.constant 0 : index
    %18 = vector.load %arg6[%c0_12, %c0_13] : memref<256x512xbf16, #tpu.memory_space<vmem>>, vector<256x512xbf16>
    %cst_14 = arith.constant dense<0.000000e+00> : vector<24x512xf32>
    %19 = tpu.matmul %17, %18, %cst_14 {dimension_numbers = #tpu.dot_dimension_numbers<[1], [0], [0], [1], [0, 0, 1, 1], [], []>} : vector<24x256xbf16>, vector<256x512xbf16>, vector<24x512xf32> -> vector<24x512xf32>
    %c0_15 = arith.constant 0 : index
    %c0_16 = arith.constant 0 : index
    %20 = vector.load %arg7[%c0_15, %c0_16] : memref<1x512xf32, #tpu.memory_space<vmem>>, vector<1x512xf32>
    %21 = vector.broadcast %20 : vector<1x512xf32> to vector<24x512xf32>
    %22 = arith.addf %19, %21 : vector<24x512xf32>
    %c0_17 = arith.constant 0 : index
    %c0_18 = arith.constant 0 : index
    %23 = vector.load %arg8[%c0_17, %c0_18] : memref<24x512xf32, #tpu.memory_space<vmem>>, vector<24x512xf32>
    tpu.vector_store %arg8[%c0_17, %c0_18], %22 {strides = array<i32>} : memref<24x512xf32, #tpu.memory_space<vmem>>, vector<24x512xf32>,
    return
  }
  func.func @transform_0(%arg0: i32) -> (i32, i32) {
    %c0_i32 = arith.constant 0 : i32
    %c0_i32_0 = arith.constant 0 : i32
    return %arg0, %c0_i32 : i32, i32
  }
  func.func @transform_1(%arg0: i32) -> (i32, i32) {
    %c0_i32 = arith.constant 0 : i32
    %c0_i32_0 = arith.constant 0 : i32
    %c0_i32_1 = arith.constant 0 : i32
    return %c0_i32, %c0_i32_0 : i32, i32
  }
  func.func @transform_2(%arg0: i32) -> (i32, i32) {
    %c0_i32 = arith.constant 0 : i32
    %c0_i32_0 = arith.constant 0 : i32
    %c0_i32_1 = arith.constant 0 : i32
    return %c0_i32, %c0_i32_0 : i32, i32
  }
  func.func @transform_3(%arg0: i32) -> (i32, i32) {
    %c0_i32 = arith.constant 0 : i32
    %c0_i32_0 = arith.constant 0 : i32
    %c0_i32_1 = arith.constant 0 : i32
    return %c0_i32, %c0_i32_0 : i32, i32
  }
  func.func @transform_4(%arg0: i32) -> (i32, i32) {
    %c0_i32 = arith.constant 0 : i32
    %c0_i32_0 = arith.constant 0 : i32
    %c0_i32_1 = arith.constant 0 : i32
    return %c0_i32, %c0_i32_0 : i32, i32
  }
  func.func @transform_5(%arg0: i32) -> (i32, i32) {
    %c0_i32 = arith.constant 0 : i32
    %c0_i32_0 = arith.constant 0 : i32
    %c0_i32_1 = arith.constant 0 : i32
    return %c0_i32, %c0_i32_0 : i32, i32
  }
  func.func @transform_6(%arg0: i32) -> (i32, i32) {
    %c0_i32 = arith.constant 0 : i32
    %c0_i32_0 = arith.constant 0 : i32
    %c0_i32_1 = arith.constant 0 : i32
    return %c0_i32, %c0_i32_0 : i32, i32
  }
  func.func @transform_7(%arg0: i32) -> (i32, i32) {
    %c0_i32 = arith.constant 0 : i32
    %c0_i32_0 = arith.constant 0 : i32
    return %arg0, %c0_i32 : i32, i32
  }
}

</mosaic_0001>

<bundles_post_ra>
// kernel: tpu_custom_call.1
= control target key start
LH: loop header
LB: loop body
LE: loop exit
PB: predicated region body
PF: predicated region fallthrough
CT: control target
= control target key end

     0   :  { %12 = vsyncpa [#allocation3], 0  ;;  %s1390_s0 = inlined_call_operand.hbm [shape: f32[20,64], index: 0, kind: input, shape index: {}]   ;;  %s1391_s1 = inlined_call_operand.hbm [shape: bf16[64,128], index: 1, kind: input, shape index: {}]   ;;  %s1392_s2 = inlined_call_operand.vmem [shape: f32[1,128], index: 2, kind: input, shape index: {}]   ;;  %s1393_s3 = inlined_call_operand.hbm [shape: bf16[128,256], index: 3, kind: input, shape index: {}]   ;;  %s1394_s4 = inlined_call_operand.vmem [shape: f32[1,256], index: 4, kind: input, shape index: {}]   ;;  %s1395_s5 = inlined_call_operand.hbm [shape: bf16[256,512], index: 5, kind: input, shape index: {}]   ;;  %s1396_s6 = inlined_call_operand.vmem [shape: f32[1,512], index: 6, kind: input, shape index: {}]   ;;  %s1397_s7 = inlined_call_operand.hbm [shape: f32[20,512], index: 7, kind: output, shape index: {}]  }
   0x1   :  { %13 = vsyncpa [#allocation6], 0 }
   0x2   :  { %14 = vsyncpa [#allocation9], 0 }
   0x3   :  { %15 = vsyncpa [#allocation4], 0  ;;  %s1256_s24 = smov [#allocation5]   ;;  %s1138_s28 = scalar_lea.hbm %s1391_s1, 512 }
   0x4   :  { %s33_s25 = sshll.u32 %s1256_s24, 4  ;;  %p1139_p0 = scmp.ne.s32.totalorder %s1391_s1, %s1138_s28  ;;  %s34_s25 = int_to_ptr.vmem [resolvable:$true] %s33_s25 }
   0x5   :  { %p1142_p1 = scmp.lt.u32.totalorder %s1138_s28, %s1391_s1 }
   0x7   :  { %p1144_p2 = pnand %p1142_p1, %p1139_p0 }
   0x9   :  { %1147 = shalt.err (!%p1144_p2)
}
   0xa   :  { %s1148_s10 = scalar_lea.vmem %s34_s25, 512  ;;  %p1153_p4 = scmp.lt.s32.totalorder %s34_s25, %s34_s25 }
   0xb   :  { %p1149_p3 = scmp.ne.s32.totalorder %s34_s25, %s1148_s10  ;;  %p1154_p5 = scmp.lt.s32.totalorder %s1148_s10, %s1148_s10 }
   0xd   :  { %p1155_p6 = por %p1154_p5, %p1153_p4 }
   0xf   :  { %p1156_p7 = pnand %p1155_p6, %p1149_p3 }
  0x11   :  { %1159 = shalt.err (!%p1156_p7)
}
  0x12   :  { %s1257_s11 = smov 64   ;;  %s1258_s12 = smov 4  }
  0x13   :  { %39 = dma.hbm_to_vmem [thread:$0]  %s1391_s1, 512, %s34_s25, [#allocation6], %s1257_s11, %s1257_s11, %s1258_s12  }
  0x14   :  { %s1259_s15 = smov [#allocation2]   ;;  %s1160_s19 = scalar_lea.hbm %s1390_s0, 384 }
  0x15   :  { %s21_s16 = sshll.u32 %s1259_s15, 4  ;;  %p1161_p8 = scmp.ne.s32.totalorder %s1390_s0, %s1160_s19  ;;  %s22_s16 = int_to_ptr.vmem [resolvable:$true] %s21_s16 }
  0x16   :  { %p1164_p9 = scmp.lt.u32.totalorder %s1160_s19, %s1390_s0 }
  0x18   :  { %p1166_p10 = pnand %p1164_p9, %p1161_p8 }
  0x1a   :  { %1169 = shalt.err (!%p1166_p10)
}
  0x1b   :  { %s1170_s24 = scalar_lea.vmem %s22_s16, 384  ;;  %p1175_p12 = scmp.lt.s32.totalorder %s22_s16, %s22_s16 }
  0x1c   :  { %p1171_p11 = scmp.ne.s32.totalorder %s22_s16, %s1170_s24  ;;  %p1176_p13 = scmp.lt.s32.totalorder %s1170_s24, %s1170_s24 }
  0x1e   :  { %p1177_p0 = por %p1176_p13, %p1175_p12 }
  0x20   :  { %p1178_p1 = pnand %p1177_p0, %p1171_p11 }
  0x22   :  { %1181 = shalt.err (!%p1178_p1)
}
  0x23   :  { %s1260_s1 = smov 128   ;;  %s1261_s25 = smov 8  }
  0x24   :  { %27 = dma.hbm_to_vmem [thread:$0]  %s1390_s0, 384, %s22_s16, [#allocation3], %s1260_s1, %s1260_s1, %s1261_s25  }
  0x25   :  { %s1262_s28 = smov [#allocation7]   ;;  %s1263_s30 = smov [#allocation8]  }
  0x26   :  { %s47_s29 = sshll.u32 %s1262_s28, 4  ;;  %s61_s8 = sshll.u32 %s1263_s30, 4  ;;  %s48_s29 = int_to_ptr.vmem [resolvable:$true] %s47_s29  ;;  %s1334_s8 = int_to_ptr.vmem [resolvable:$true] %s61_s8 }
  0x27   :  { %s1182_s11 = scalar_lea.hbm %s1393_s3, 2048 }
  0x28   :  { %p1183_p2 = scmp.ne.s32.totalorder %s1393_s3, %s1182_s11  ;;  %p1186_p3 = scmp.lt.u32.totalorder %s1182_s11, %s1393_s3 }
  0x2a   :  { %p1188_p4 = pnand %p1186_p3, %p1183_p2 }
  0x2c   :  { %1191 = shalt.err (!%p1188_p4)
}
  0x2d   :  { %s1192_s0 = scalar_lea.vmem %s48_s29, 2048  ;;  %p1197_p6 = scmp.lt.s32.totalorder %s48_s29, %s48_s29 }
  0x2e   :  { %p1193_p5 = scmp.ne.s32.totalorder %s48_s29, %s1192_s0  ;;  %p1198_p7 = scmp.lt.s32.totalorder %s1192_s0, %s1192_s0 }
  0x30   :  { %p1199_p8 = por %p1198_p7, %p1197_p6 }
  0x32   :  { %p1200_p9 = pnand %p1199_p8, %p1193_p5 }
  0x34   :  { %1203 = shalt.err (!%p1200_p9)
}
  0x35   :  { %53 = dma.hbm_to_vmem [thread:$0]  %s1393_s3, 2048, %s48_s29, [#allocation6], %s1260_s1, %s1260_s1, %s1261_s25  }
  0x36   :  { %s1204_s20 = scalar_lea.hbm %s1395_s5, 8192 }
  0x37   :  { %p1205_p10 = scmp.ne.s32.totalorder %s1395_s5, %s1204_s20  ;;  %p1208_p11 = scmp.lt.u32.totalorder %s1204_s20, %s1395_s5 }
  0x39   :  { %p1210_p12 = pnand %p1208_p11, %p1205_p10 }
  0x3b   :  { %1213 = shalt.err (!%p1210_p12)
}
  0x3c   :  { %s1214_s26 = scalar_lea.vmem %s1334_s8, 8192  ;;  %p1219_p0 = scmp.lt.s32.totalorder %s1334_s8, %s1334_s8 }
  0x3d   :  { %p1215_p13 = scmp.ne.s32.totalorder %s1334_s8, %s1214_s26  ;;  %p1220_p1 = scmp.lt.s32.totalorder %s1214_s26, %s1214_s26 }
  0x3f   :  { %p1221_p2 = por %p1220_p1, %p1219_p0 }
  0x41   :  { %p1222_p3 = pnand %p1221_p2, %p1215_p13 }
  0x43   :  { %1225 = shalt.err (!%p1222_p3)
}
  0x44   :  { %s1264_s3 = smov 256   ;;  %s1265_s1 = smov 16  }
  0x45   :  { %67 = dma.hbm_to_vmem [thread:$0]  %s1395_s5, 8192, %s1334_s8, [#allocation9], %s1264_s3, %s1264_s3, %s1265_s1  }
  0x46   :  { %1248 = dma.done.wait [#allocation3], 384  }
  0x47   :  { %1249 = vsyncadd [#allocation3], 4294966912 }
  0x48   :  { %1250 = dma.done.wait [#allocation6], 2560  }
  0x49   :  { %1251 = vsyncadd [#allocation6], 4294964736 }
  0x4a   :  { %1252 = dma.done.wait [#allocation9], 8192  }
  0x4b   :  { %1253 = vsyncadd [#allocation9], 4294959104  ;;  %v1014_v0 = vld [vmem:[#allocation5] sm:$0xff]   ;;  %v1015_v1 = vld [vmem:[#allocation5 + $0x8] sm:$0xff]   ;;  %vm127_vm0 = vcmask 523264   ;;  %v1266_v25 = vmov 0  }
  0x4c   :  { %988 = vmatprep.subr.bf16.mxu0 %v1014_v0  ;;  %v1016_v2 = vld [vmem:[#allocation5 + $0x10] sm:$0xff]   ;;  %v83_v3 = vld [vmem:[#allocation2] sm:$0xff]  ;;  %v1017_v9 = vld [vmem:[#allocation5 + $0x18] sm:$0xff]   ;;  %327 = vmatprep.mubr.bf16.mxu1 %v1266_v25 }
  0x4d   :  { %989 = vmatpush3.bf16.msra.mxu0 %v1014_v0  ;;  %v84_v4 = vld [vmem:[#allocation2 + $0x8] sm:$0xff]  ;;  %v1018_v6 = vld [vmem:[#allocation7 + $0x4] ss:$8 sps:$4 sm:$0xff]   ;;  %v1020_v7 = vld [vmem:[#allocation7] ss:$8 sps:$4 sm:$0xff]  }
  0x4e   :  { %990 = vmatprep.subr.bf16.mxu0 %v1015_v1  ;;  %v86_v5 = vpack.c.bf16 %v84_v4, %v83_v3  ;;  %v1021_v8 = vld [vmem:[#allocation7 + $0x14] ss:$8 sps:$4 sm:$0xff]   ;;  %295 = vmatprep.subr.bf16.mxu1 %v1018_v6  ;;  %v1023_v10 = vld [vmem:[#allocation7 + $0x10] ss:$8 sps:$4 sm:$0xff]   ;;  %v1024_v11 = vld [vmem:[#allocation7 + $0x24] ss:$8 sps:$4 sm:$0xff]  }
  0x4f   :  { %296 = vmatpush1.bf16.msra.mxu1 %v1020_v7  ;;  %v85_v12 = vld [vmem:[#allocation2 + $0x10] sm:$0xff]  ;;  %v1026_v13 = vld [vmem:[#allocation7 + $0x20] ss:$8 sps:$4 sm:$0xff]   ;;  %v1030_v17 = vld [vmem:[#allocation7 + $0x44] ss:$8 sps:$4 sm:$0xff]  }
  0x50   :  { %996 = vmatprep.mubr.msk.bf16.mxu0 %vm127_vm0, %v86_v5  ;;  %297 = vmatprep.subr.bf16.mxu1 %v1021_v8  ;;  %v1027_v14 = vld [vmem:[#allocation7 + $0x34] ss:$8 sps:$4 sm:$0xff]   ;;  %v87_v15 = vpack.c.bf16 %v85_v12, %v85_v12  ;;  %v1029_v16 = vld [vmem:[#allocation7 + $0x30] ss:$8 sps:$4 sm:$0xff]   ;;  %v1032_v18 = vld [vmem:[#allocation7 + $0x40] ss:$8 sps:$4 sm:$0xff]  }
  0x51   :  { %991 = vmatpush3.bf16.msra.mxu0 %v1015_v1  ;;  %v1033_v19 = vld [vmem:[#allocation7 + $0x54] ss:$8 sps:$4 sm:$0xff]   ;;  %v1035_v20 = vld [vmem:[#allocation7 + $0x50] ss:$8 sps:$4 sm:$0xff]   ;;  %v1036_v21 = vld [vmem:[#allocation7 + $0x64] ss:$8 sps:$4 sm:$0xff]  }
  0x52   :  { %992 = vmatprep.subr.bf16.mxu0 %v1016_v2  ;;  %v1038_v22 = vld [vmem:[#allocation7 + $0x60] ss:$8 sps:$4 sm:$0xff]   ;;  %v1039_v23 = vld [vmem:[#allocation7 + $0x74] ss:$8 sps:$4 sm:$0xff]   ;;  %v1041_v24 = vld [vmem:[#allocation7 + $0x70] ss:$8 sps:$4 sm:$0xff]  }
  0x53   :  { %298 = vmatpush1.bf16.msra.mxu1 %v1023_v10  ;;  %v1042_v26 = vld [vmem:[#allocation8] ss:$16 sps:$4 sm:$0xff]   ;;  %v1044_v27 = vld [vmem:[#allocation8 + $0x4] ss:$16 sps:$4 sm:$0xff]   ;;  %v1047_v28 = vld [vmem:[#allocation8 + $0xc] ss:$16 sps:$4 sm:$0xff]  }
  0x54   :  { %299 = vmatprep.subr.bf16.mxu1 %v1024_v11  ;;  %v1050_v29 = vld [vmem:[#allocation8 + $0x24] ss:$16 sps:$4 sm:$0xff]   ;;  %v1048_v30 = vld [vmem:[#allocation8 + $0x20] ss:$16 sps:$4 sm:$0xff]   ;;  %v895_v55 = vld [vmem:[%s1392_s2] ss:$0 sm:$0xff] }
  0x55   :  { %993 = vmatpush3.bf16.msra.mxu0 %v1016_v2  ;;  %v1056_v31 = vld [vmem:[#allocation8 + $0x44] ss:$16 sps:$4 sm:$0xff]   ;;  %v1054_v32 = vld [vmem:[#allocation8 + $0x40] ss:$16 sps:$4 sm:$0xff]   ;;  %v1045_v0 = vld [vmem:[#allocation8 + $0x8] ss:$16 sps:$4 sm:$0xff]  }
  0x56   :  { %994 = vmatprep.subr.bf16.mxu0 %v1017_v9  ;;  %v1062_v33 = vld [vmem:[#allocation8 + $0x64] ss:$16 sps:$4 sm:$0xff]   ;;  %v1060_v34 = vld [vmem:[#allocation8 + $0x60] ss:$16 sps:$4 sm:$0xff]   ;;  %v1053_v3 = vld [vmem:[#allocation8 + $0x2c] ss:$16 sps:$4 sm:$0xff]  }
  0x57   :  { %300 = vmatpush1.bf16.msra.mxu1 %v1026_v13  ;;  %v1068_v35 = vld [vmem:[#allocation8 + $0x84] ss:$16 sps:$4 sm:$0xff]   ;;  %v1066_v36 = vld [vmem:[#allocation8 + $0x80] ss:$16 sps:$4 sm:$0xff]   ;;  %v1051_v4 = vld [vmem:[#allocation8 + $0x28] ss:$16 sps:$4 sm:$0xff]  }
  0x58   :  { %301 = vmatprep.subr.bf16.mxu1 %v1027_v14  ;;  %v1074_v37 = vld [vmem:[#allocation8 + $0xa4] ss:$16 sps:$4 sm:$0xff]   ;;  %v1072_v38 = vld [vmem:[#allocation8 + $0xa0] ss:$16 sps:$4 sm:$0xff]   ;;  %v1059_v6 = vld [vmem:[#allocation8 + $0x4c] ss:$16 sps:$4 sm:$0xff]  }
  0x59   :  { %995 = vmatpush3.bf16.msra.mxu0 %v1017_v9  ;;  %v1080_v39 = vld [vmem:[#allocation8 + $0xc4] ss:$16 sps:$4 sm:$0xff]   ;;  %v1078_v40 = vld [vmem:[#allocation8 + $0xc0] ss:$16 sps:$4 sm:$0xff]   ;;  %v1057_v7 = vld [vmem:[#allocation8 + $0x48] ss:$16 sps:$4 sm:$0xff]  }
  0x5a   :  { %762 = vmatprep.subr.bf16.mxu0 %v1044_v27  ;;  %v1086_v41 = vld [vmem:[#allocation8 + $0xe4] ss:$16 sps:$4 sm:$0xff]   ;;  %v1084_v42 = vld [vmem:[#allocation8 + $0xe0] ss:$16 sps:$4 sm:$0xff]   ;;  %v1065_v9 = vld [vmem:[#allocation8 + $0x6c] ss:$16 sps:$4 sm:$0xff]  }
  0x5b   :  { %302 = vmatpush1.bf16.msra.mxu1 %v1029_v16  ;;  %v1092_v43 = vld [vmem:[#allocation8 + $0x104] ss:$16 sps:$4 sm:$0xff]   ;;  %v1090_v44 = vld [vmem:[#allocation8 + $0x100] ss:$16 sps:$4 sm:$0xff]   ;;  %v1063_v10 = vld [vmem:[#allocation8 + $0x68] ss:$16 sps:$4 sm:$0xff]  }
  0x5c   :  { %997 = vmatmul.mubr.msk.bf16.vlgmr.msra.gmra.mrb[0].mxu0 %vm127_vm0, %v87_v15  ;;  %303 = vmatprep.subr.bf16.mxu1 %v1030_v17  ;;  %v1098_v45 = vld [vmem:[#allocation8 + $0x124] ss:$16 sps:$4 sm:$0xff]   ;;  %v1096_v46 = vld [vmem:[#allocation8 + $0x120] ss:$16 sps:$4 sm:$0xff]   ;;  %v1071_v11 = vld [vmem:[#allocation8 + $0x8c] ss:$16 sps:$4 sm:$0xff]  }
  0x5d   :  { %763 = vmatpush1.bf16.msra.mxu0 %v1042_v26  ;;  %v1104_v47 = vld [vmem:[#allocation8 + $0x144] ss:$16 sps:$4 sm:$0xff]   ;;  %v1102_v48 = vld [vmem:[#allocation8 + $0x140] ss:$16 sps:$4 sm:$0xff]   ;;  %v1069_v12 = vld [vmem:[#allocation8 + $0x88] ss:$16 sps:$4 sm:$0xff]  }
  0x5e   :  { %764 = vmatprep.subr.bf16.mxu0 %v1050_v29  ;;  %v1110_v49 = vld [vmem:[#allocation8 + $0x164] ss:$16 sps:$4 sm:$0xff]   ;;  %v1108_v50 = vld [vmem:[#allocation8 + $0x160] ss:$16 sps:$4 sm:$0xff]   ;;  %v1077_v13 = vld [vmem:[#allocation8 + $0xac] ss:$16 sps:$4 sm:$0xff]  }
  0x5f   :  { %304 = vmatpush1.bf16.msra.mxu1 %v1032_v18  ;;  %v1116_v51 = vld [vmem:[#allocation8 + $0x184] ss:$16 sps:$4 sm:$0xff]   ;;  %v1114_v52 = vld [vmem:[#allocation8 + $0x180] ss:$16 sps:$4 sm:$0xff]   ;;  %v1075_v14 = vld [vmem:[#allocation8 + $0xa8] ss:$16 sps:$4 sm:$0xff]  }
  0x60   :  { %305 = vmatprep.subr.bf16.mxu1 %v1033_v19  ;;  %v1122_v53 = vld [vmem:[#allocation8 + $0x1a4] ss:$16 sps:$4 sm:$0xff]   ;;  %v1120_v54 = vld [vmem:[#allocation8 + $0x1a0] ss:$16 sps:$4 sm:$0xff]   ;;  %v1083_v15 = vld [vmem:[#allocation8 + $0xcc] ss:$16 sps:$4 sm:$0xff]  }
  0x61   :  { %765 = vmatpush1.bf16.msra.mxu0 %v1048_v30  ;;  %v1081_v16 = vld [vmem:[#allocation8 + $0xc8] ss:$16 sps:$4 sm:$0xff]   ;;  %v1089_v17 = vld [vmem:[#allocation8 + $0xec] ss:$16 sps:$4 sm:$0xff]  }
  0x62   :  { %766 = vmatprep.subr.bf16.mxu0 %v1056_v31  ;;  %v1087_v18 = vld [vmem:[#allocation8 + $0xe8] ss:$16 sps:$4 sm:$0xff]   ;;  %v1095_v19 = vld [vmem:[#allocation8 + $0x10c] ss:$16 sps:$4 sm:$0xff]   ;;  %v1128_v31 = vld [vmem:[#allocation8 + $0x1c4] ss:$16 sps:$4 sm:$0xff]  }
  0x63   :  { %306 = vmatpush1.bf16.msra.mxu1 %v1035_v20  ;;  %v1093_v20 = vld [vmem:[#allocation8 + $0x108] ss:$16 sps:$4 sm:$0xff]   ;;  %v1119_v27 = vld [vmem:[#allocation8 + $0x18c] ss:$16 sps:$4 sm:$0xff]  }
  0x64   :  { %307 = vmatprep.subr.bf16.mxu1 %v1036_v21  ;;  %v1101_v21 = vld [vmem:[#allocation8 + $0x12c] ss:$16 sps:$4 sm:$0xff]   ;;  %v1111_v26 = vld [vmem:[#allocation8 + $0x168] ss:$16 sps:$4 sm:$0xff]  }
  0x65   :  { %767 = vmatpush1.bf16.msra.mxu0 %v1054_v32  ;;  %v1125_v29 = vld [vmem:[#allocation8 + $0x1ac] ss:$16 sps:$4 sm:$0xff]   ;;  %v1123_v30 = vld [vmem:[#allocation8 + $0x1a8] ss:$16 sps:$4 sm:$0xff]  }
  0x66   :  { %768 = vmatprep.subr.bf16.mxu0 %v1062_v33  ;;  %v1131_v32 = vld [vmem:[#allocation8 + $0x1cc] ss:$16 sps:$4 sm:$0xff]   ;;  %v1126_v33 = vld [vmem:[#allocation8 + $0x1c0] ss:$16 sps:$4 sm:$0xff]  }
  0x67   :  { %308 = vmatpush1.bf16.msra.mxu1 %v1038_v22  ;;  %v1099_v22 = vld [vmem:[#allocation8 + $0x128] ss:$16 sps:$4 sm:$0xff]  }
  0x68   :  { %309 = vmatprep.subr.bf16.mxu1 %v1039_v23  ;;  %v1107_v23 = vld [vmem:[#allocation8 + $0x14c] ss:$16 sps:$4 sm:$0xff]  }
  0x69   :  { %769 = vmatpush1.bf16.msra.mxu0 %v1060_v34  ;;  %v1129_v34 = vld [vmem:[#allocation8 + $0x1c8] ss:$16 sps:$4 sm:$0xff]  }
  0x6a   :  { %770 = vmatprep.subr.bf16.mxu0 %v1068_v35  ;;  %v1134_v35 = vld [vmem:[#allocation8 + $0x1e4] ss:$16 sps:$4 sm:$0xff]  }
  0x6b   :  { %310 = vmatpush1.bf16.msra.mxu1 %v1041_v24  ;;  %v1105_v24 = vld [vmem:[#allocation8 + $0x148] ss:$16 sps:$4 sm:$0xff]  }
  0x6c   :  { %813 = vmatprep.subr.bf16.mxu1 %v1047_v28  ;;  %v1117_v28 = vld [vmem:[#allocation8 + $0x188] ss:$16 sps:$4 sm:$0xff]  }
  0x6d   :  { %771 = vmatpush1.bf16.msra.mxu0 %v1066_v36  ;;  %v1137_v36 = vld [vmem:[#allocation8 + $0x1ec] ss:$16 sps:$4 sm:$0xff]  }
  0x6e   :  { %772 = vmatprep.subr.bf16.mxu0 %v1074_v37  ;;  %v1132_v37 = vld [vmem:[#allocation8 + $0x1e0] ss:$16 sps:$4 sm:$0xff]  }
  0x71   :  { %773 = vmatpush1.bf16.msra.mxu0 %v1072_v38  ;;  %v1135_v38 = vld [vmem:[#allocation8 + $0x1e8] ss:$16 sps:$4 sm:$0xff]  }
  0x72   :  { %774 = vmatprep.subr.bf16.mxu0 %v1080_v39  ;;  %v205_v39 = vlaneseq }
  0x75   :  { %775 = vmatpush1.bf16.msra.mxu0 %v1078_v40  ;;  %v206_v40 = vshrl.u32 %v205_v39, 7 }
  0x76   :  { %776 = vmatprep.subr.bf16.mxu0 %v1086_v41 }
  0x77   :  { %v207_v41 = vsub.s32 0, %v206_v40 }
  0x79   :  { %777 = vmatpush1.bf16.msra.mxu0 %v1084_v42  ;;  %v203_v42 = vld [vmem:[%s1394_s4] sm:$0x3] }
  0x7a   :  { %778 = vmatprep.subr.bf16.mxu0 %v1092_v43  ;;  %v211_v43 = vsub.s32 1, %v206_v40 }
  0x7d   :  { %779 = vmatpush1.bf16.msra.mxu0 %v1090_v44  ;;  %v208_v44 = vrot.slane %v203_v42, %v207_v41 }
  0x7e   :  { %780 = vmatprep.subr.bf16.mxu0 %v1098_v45  ;;  %v212_v45 = vrot.slane %v203_v42, %v211_v43 }
  0x81   :  { %781 = vmatpush1.bf16.msra.mxu0 %v1096_v46 }
  0x82   :  { %782 = vmatprep.subr.bf16.mxu0 %v1104_v47 }
  0x85   :  { %783 = vmatpush1.bf16.msra.mxu0 %v1102_v48 }
  0x86   :  { %784 = vmatprep.subr.bf16.mxu0 %v1110_v49 }
  0x89   :  { %785 = vmatpush1.bf16.msra.mxu0 %v1108_v50 }
  0x8a   :  { %786 = vmatprep.subr.bf16.mxu0 %v1116_v51 }
  0x8d   :  { %787 = vmatpush1.bf16.msra.mxu0 %v1114_v52 }
  0x8e   :  { %788 = vmatprep.subr.bf16.mxu0 %v1122_v53 }
  0x91   :  { %789 = vmatpush1.bf16.msra.mxu0 %v1120_v54 }
  0x92   :  { %790 = vmatprep.subr.bf16.mxu0 %v1128_v31 }
  0x95   :  { %791 = vmatpush1.bf16.msra.mxu0 %v1126_v33 }
  0x96   :  { %792 = vmatprep.subr.bf16.mxu0 %v1134_v35 }
  0x99   :  { %793 = vmatpush1.bf16.msra.mxu0 %v1132_v37 }
 0x12f   :  { %v998_v56 = vpop.f32.mrb[0].mxu0 }
 0x130   :  { %v168_v57 = vpop.f32.mrb[1].mxu0  ;;  %v177_v1 = vadd.f32 %v998_v56, %v895_v55 }
 0x131   :  { %v169_v58 = vadd.f32 %v895_v55, %v168_v57  ;;  %v999_v59 = vpop.f32.mrb[2].mxu0 }
 0x132   :  { %v171_v60 = vpop.f32.mrb[3].mxu0  ;;  %v184_v5 = vmax.f32 %v177_v1, 0.0 }
 0x133   :  { %v172_v61 = vadd.f32 %v895_v55, %v171_v60  ;;  %v182_v62 = vmax.f32 %v169_v58, 0.0 }
 0x134   :  { %v186_v8 = vpack.c.bf16 %v184_v5, %v184_v5 }
 0x135   :  { %v183_v63 = vmax.f32 %v172_v61, 0.0 }
 0x137   :  { %v185_v2 = vpack.c.bf16 %v183_v63, %v182_v62 }
 0x139   :  { %328 = vmatmul.mubr.bf16.vlgmr.msra.gmra.mrb[0].mxu1 %v185_v2 }
 0x13a   :  { %337 = vmatprep.mubr.bf16.mxu1 %v1266_v25  ;;  %814 = vmatpush1.bf16.msra.mxu1 %v1045_v0  ;;  %v1113_v25 = vld [vmem:[#allocation8 + $0x16c] ss:$16 sps:$4 sm:$0xff]  }
 0x13b   :  { %815 = vmatprep.subr.bf16.mxu1 %v1053_v3 }
 0x13e   :  { %816 = vmatpush1.bf16.msra.mxu1 %v1051_v4 }
 0x13f   :  { %817 = vmatprep.subr.bf16.mxu1 %v1059_v6  ;;  %v432_v6 = vsub.s32 2, %v206_v40 }
 0x141   :  { %338 = vmatmul.mubr.bf16.gmra.mrb[4].mxu1 %v186_v8  ;;  %v436_v8 = vsub.s32 3, %v206_v40 }
 0x142   :  { %818 = vmatpush1.bf16.msra.mxu1 %v1057_v7  ;;  %v420_v7 = vld [vmem:[%s1396_s6] sm:$0xf]  ;;  %s1267_s6 = smov [#allocation10]  }
 0x143   :  { %819 = vmatprep.subr.bf16.mxu1 %v1065_v9  ;;  %v425_v9 = vrot.slane %v420_v7, %v207_v41  ;;  %s881_s8 = sshll.u32 %s1267_s6, 4  ;;  %s882_s8 = int_to_ptr.vmem [resolvable:$true] %s881_s8 }
 0x144   :  { %s1226_s9 = scalar_lea.vmem %s882_s8, 1536  ;;  %p1231_p5 = scmp.lt.s32.totalorder %s882_s8, %s882_s8 }
 0x145   :  { %p1227_p4 = scmp.ne.s32.totalorder %s882_s8, %s1226_s9  ;;  %p1232_p6 = scmp.lt.s32.totalorder %s1226_s9, %s1226_s9 }
 0x146   :  { %820 = vmatpush1.bf16.msra.mxu1 %v1063_v10  ;;  %v433_v10 = vrot.slane %v420_v7, %v432_v6 }
 0x147   :  { %821 = vmatprep.subr.bf16.mxu1 %v1071_v11  ;;  %v429_v11 = vrot.slane %v420_v7, %v211_v43  ;;  %p1233_p7 = por %p1232_p6, %p1231_p5 }
 0x149   :  { %p1234_p8 = pnand %p1233_p7, %p1227_p4 }
 0x14a   :  { %822 = vmatpush1.bf16.msra.mxu1 %v1069_v12  ;;  %v437_v12 = vrot.slane %v420_v7, %v436_v8 }
 0x14b   :  { %823 = vmatprep.subr.bf16.mxu1 %v1077_v13 }
 0x14e   :  { %824 = vmatpush1.bf16.msra.mxu1 %v1075_v14 }
 0x14f   :  { %825 = vmatprep.subr.bf16.mxu1 %v1083_v15 }
 0x152   :  { %826 = vmatpush1.bf16.msra.mxu1 %v1081_v16 }
 0x153   :  { %827 = vmatprep.subr.bf16.mxu1 %v1089_v17 }
 0x156   :  { %828 = vmatpush1.bf16.msra.mxu1 %v1087_v18 }
 0x157   :  { %829 = vmatprep.subr.bf16.mxu1 %v1095_v19 }
 0x15a   :  { %830 = vmatpush1.bf16.msra.mxu1 %v1093_v20 }
 0x15b   :  { %831 = vmatprep.subr.bf16.mxu1 %v1101_v21 }
 0x15e   :  { %832 = vmatpush1.bf16.msra.mxu1 %v1099_v22 }
 0x15f   :  { %833 = vmatprep.subr.bf16.mxu1 %v1107_v23 }
 0x162   :  { %834 = vmatpush1.bf16.msra.mxu1 %v1105_v24 }
 0x163   :  { %835 = vmatprep.subr.bf16.mxu1 %v1113_v25 }
 0x166   :  { %836 = vmatpush1.bf16.msra.mxu1 %v1111_v26 }
 0x167   :  { %837 = vmatprep.subr.bf16.mxu1 %v1119_v27 }
 0x16a   :  { %838 = vmatpush1.bf16.msra.mxu1 %v1117_v28 }
 0x16b   :  { %839 = vmatprep.subr.bf16.mxu1 %v1125_v29 }
 0x16e   :  { %840 = vmatpush1.bf16.msra.mxu1 %v1123_v30 }
 0x16f   :  { %841 = vmatprep.subr.bf16.mxu1 %v1131_v32 }
 0x172   :  { %842 = vmatpush1.bf16.msra.mxu1 %v1129_v34 }
 0x173   :  { %843 = vmatprep.subr.bf16.mxu1 %v1137_v36 }
 0x176   :  { %844 = vmatpush1.bf16.msra.mxu1 %v1135_v38 }
 0x20c   :  { %v329_v46 = vpop.f32.mrb[0].mxu1 }
 0x20d   :  { %v330_v47 = vadd.f32 %v329_v46, %v208_v44  ;;  %v331_v48 = vpop.f32.mrb[1].mxu1 }
 0x20e   :  { %v332_v49 = vadd.f32 %v331_v48, %v212_v45  ;;  %v333_v50 = vpop.f32.mrb[2].mxu1 }
 0x20f   :  { %v334_v51 = vadd.f32 %v333_v50, %v208_v44  ;;  %v335_v52 = vpop.f32.mrb[3].mxu1  ;;  %v346_v54 = vmax.f32 %v330_v47, 0.0 }
 0x210   :  { %v336_v53 = vadd.f32 %v335_v52, %v212_v45  ;;  %v347_v56 = vmax.f32 %v332_v49, 0.0 }
 0x211   :  { %v348_v55 = vmax.f32 %v334_v51, 0.0 }
 0x212   :  { %v349_v57 = vmax.f32 %v336_v53, 0.0 }
 0x213   :  { %v352_v58 = vpack.c.bf16 %v348_v55, %v346_v54 }
 0x214   :  { %v353_v59 = vpack.c.bf16 %v349_v57, %v347_v56  ;;  %v339_v60 = vpop.f32.mrb[4].mxu1 }
 0x215   :  { %v340_v61 = vadd.f32 %v339_v60, %v208_v44  ;;  %v341_v62 = vpop.f32.mrb[5].mxu1 }
 0x216   :  { %v342_v63 = vadd.f32 %v341_v62, %v212_v45  ;;  %v343_v0 = vpop.f32.mrb[6].mxu1  ;;  %794 = vmatprep.mubr.bf16.mxu0 %v353_v59  ;;  %845 = vmatprep.mubr.bf16.mxu1 %v353_v59 }
 0x217   :  { %v344_v1 = vpop.f32.mrb[7].mxu1  ;;  %795 = vmatmul.mubr.bf16.vlgmr.msra.gmra.mrb[4].mxu0 %v352_v58  ;;  %846 = vmatmul.mubr.bf16.vlgmr.msra.gmra.mrb[8].mxu1 %v352_v58  ;;  %v350_v3 = vmax.f32 %v340_v61, 0.0 }
 0x218   :  { %v351_v2 = vmax.f32 %v342_v63, 0.0 }
 0x219   :  { %v354_v5 = vpack.c.bf16 %v350_v3, %v350_v3 }
 0x21a   :  { %v355_v4 = vpack.c.bf16 %v351_v2, %v351_v2 }
 0x21c   :  { %804 = vmatprep.mubr.bf16.mxu0 %v355_v4  ;;  %855 = vmatprep.mubr.bf16.mxu1 %v355_v4 }
 0x21f   :  { %805 = vmatmul.mubr.bf16.gmra.mrb[8].mxu0 %v354_v5  ;;  %856 = vmatmul.mubr.bf16.gmra.mrb[12].mxu1 %v354_v5 }
 0x2ea   :  { %v796_v13 = vpop.f32.mrb[4].mxu0  ;;  %v847_v14 = vpop.f32.mrb[8].mxu1 }
 0x2eb   :  { %v797_v15 = vadd.f32 %v796_v13, %v425_v9  ;;  %v848_v16 = vadd.f32 %v847_v14, %v433_v10  ;;  %v798_v17 = vpop.f32.mrb[5].mxu0  ;;  %v849_v18 = vpop.f32.mrb[9].mxu1 }
 0x2ec   :  { %v799_v19 = vadd.f32 %v798_v17, %v429_v11  ;;  %v850_v20 = vadd.f32 %v849_v18, %v437_v12  ;;  %v800_v21 = vpop.f32.mrb[6].mxu0  ;;  %v851_v22 = vpop.f32.mrb[10].mxu1 }
 0x2ed   :  { %864 = vst [vmem:[#allocation10] sm:$0xff] %v797_v15  ;;  %866 = vst [vmem:[#allocation10 + $0x10] sm:$0xff] %v848_v16  ;;  %v801_v23 = vadd.f32 %v800_v21, %v425_v9  ;;  %v852_v24 = vadd.f32 %v851_v22, %v433_v10  ;;  %v802_v25 = vpop.f32.mrb[7].mxu0  ;;  %v853_v26 = vpop.f32.mrb[11].mxu1 }
 0x2ee   :  { %865 = vst [vmem:[#allocation10 + $0x8] sm:$0xff] %v799_v19  ;;  %867 = vst [vmem:[#allocation10 + $0x18] sm:$0xff] %v850_v20  ;;  %v803_v27 = vadd.f32 %v802_v25, %v429_v11  ;;  %v854_v28 = vadd.f32 %v853_v26, %v437_v12 }
 0x2ef   :  { %868 = vst [vmem:[#allocation10 + $0x20] sm:$0xff] %v801_v23  ;;  %870 = vst [vmem:[#allocation10 + $0x30] sm:$0xff] %v852_v24 }
 0x2f0   :  { %869 = vst [vmem:[#allocation10 + $0x28] sm:$0xff] %v803_v27  ;;  %871 = vst [vmem:[#allocation10 + $0x38] sm:$0xff] %v854_v28 }
 0x2f2   :  { %v806_v29 = vpop.f32.mrb[8].mxu0  ;;  %v857_v30 = vpop.f32.mrb[12].mxu1 }
 0x2f3   :  { %v807_v31 = vadd.f32 %v806_v29, %v425_v9  ;;  %v858_v32 = vadd.f32 %v857_v30, %v433_v10  ;;  %v808_v33 = vpop.f32.mrb[9].mxu0  ;;  %v859_v34 = vpop.f32.mrb[13].mxu1 }
 0x2f4   :  { %v809_v35 = vadd.f32 %v808_v33, %v429_v11  ;;  %v860_v36 = vadd.f32 %v859_v34, %v437_v12  ;;  %v810_v37 = vpop.f32.mrb[10].mxu0  ;;  %v861_v38 = vpop.f32.mrb[14].mxu1 }
 0x2f5   :  { %872 = vst [vmem:[#allocation10 + $0x40] sm:$0xff] %v807_v31  ;;  %874 = vst [vmem:[#allocation10 + $0x50] sm:$0xff] %v858_v32  ;;  %v811_v39 = vpop.f32.mrb[11].mxu0  ;;  %v862_v40 = vpop.f32.mrb[15].mxu1 }
 0x2f6   :  { %873 = vst [vmem:[#allocation10 + $0x48] sm:$0xff] %v809_v35  ;;  %875 = vst [vmem:[#allocation10 + $0x58] sm:$0xff] %v860_v36 }
 0x2f7   :  { %1237 = shalt.err (!%p1234_p8)
}
 0x2f8   :  { %s1238_s12 = scalar_lea.hbm %s1397_s7, 1536 }
 0x2f9   :  { %p1239_p9 = scmp.ne.s32.totalorder %s1397_s7, %s1238_s12  ;;  %p1242_p10 = scmp.lt.u32.totalorder %s1238_s12, %s1397_s7 }
 0x2fb   :  { %p1244_p11 = pnand %p1242_p10, %p1239_p9 }
 0x2fd   :  { %1247 = shalt.err (!%p1244_p11)
}
 0x2fe   :  { %s1268_s16 = smov 512   ;;  %s1269_s17 = smov 32  }
 0x2ff   :  { %887 = dma.vmem_to_hbm [thread:$0]  %s882_s8, 1536, %s1397_s7, [#allocation4], %s1268_s16, %s1268_s16, %s1269_s17  }
 0x300   :  { %1254 = dma.done.wait [#allocation4], 1536  }
 0x301   :  { %1255 = vsyncadd [#allocation4], 4294965760 }
 0x302   :  { %891 = vsyncpa [#allocation3], 1 }
 0x303   :  { %892 = vsyncpa [#allocation6], 1 }
 0x304   :  { %893 = vsyncpa [#allocation9], 1 }
 0x305   :  { %894 = vsyncpa [#allocation4], 1 }

</bundles_post_ra>
